<compile_context>
chip_gen: v7x
topology: tpu7x:2x2x1
jax: 0.10.0
libtpu: 0.0.40
codegen_flags: <defaults>
</compile_context>

<pallas_src>
import functools

import jax
import jax.numpy as jnp
from jax.experimental import pallas as pl
from jax.experimental.pallas import tpu as pltpu


def _round_up(x, m):
    return (x + m - 1) // m * m


def _l2norm(x, eps):
    # F.normalize(x, p=2, dim=1, eps=1e-12):  x / max(||x||, eps)
    ssq = jnp.sum(x * x, axis=1, keepdims=True)
    return x * jax.lax.rsqrt(jnp.maximum(ssq, eps * eps))   # single EUP rsqrt


def _ssl_loss_kernel(ue1_ref, ue2_ref, e2_ref, out_ref,
                     n1_scr, pos_scr, acc_scr,
                     *, inv_temp, u_valid, tu, mask_u, eps):
    k = pl.program_id(1)

    # First U-tile for this B-tile: normalize the gathered rows once, compute
    # the positive score, zero the running sum-of-exp accumulator.
    @pl.when(k == 0)
    def _init():
        n1 = _l2norm(ue1_ref[...].astype(jnp.float32), eps)             # (TB, D)
        n2 = _l2norm(ue2_ref[...].astype(jnp.float32), eps)             # (TB, D)
        pos_scr[...] = jnp.sum(n1 * n2, axis=1, keepdims=True) * inv_temp
        n1_scr[...] = n1.astype(jnp.bfloat16)
        acc_scr[...] = jnp.zeros_like(acc_scr)

    # Normalize this U-tile of sub2 and form the (TB, TU) logits tile on the
    # MXU (bf16 operands, f32 accumulation).
    n2_all = _l2norm(e2_ref[...].astype(jnp.float32), eps)              # (TU, D)
    ttl = jnp.einsum("bd,ud->bu",
                     n1_scr[...], n2_all.astype(jnp.bfloat16),
                     preferred_element_type=jnp.float32) * inv_temp     # (TB, TU)

    # Rows are unit-norm -> ttl <= inv_temp: static max bound, no running max.
    e = jnp.exp(ttl - inv_temp)                                         # (TB, TU)
    if mask_u:
        col = k * tu + jax.lax.broadcasted_iota(jnp.int32, e.shape, 1)
        e = jnp.where(col < u_valid, e, 0.0)
    acc_scr[...] += jnp.sum(e, axis=1, keepdims=True)                   # (TB, 1)

    @pl.when(k == pl.num_programs(1) - 1)
    def _finalize():
        lse = jnp.log(acc_scr[...]) + inv_temp                          # (TB, 1)
        # per-user  -log( exp(pos/T) / sum_j exp(ttl_j/T) )  =  lse - pos/T
        out_ref[...] = lse - pos_scr[...]


@functools.partial(jax.jit,
                   static_argnames=("ssl_temp", "ssl_reg", "block_b", "block_u"))
def calc_ssl_loss(ua_embeddings_sub1, ua_embeddings_sub2, users, *,
                  ssl_temp, ssl_reg, block_b=None, block_u=None):
    """Tiled Pallas forward of calc_ssl_loss. Returns scalar f32 loss."""
    U, D = ua_embeddings_sub2.shape
    users = users.astype(jnp.int32)
    B = users.shape[0]

    # User-row gather in the wrapper (XLA gather) -> no one-hot matmuls and no
    # sub1 (U, D) traffic through the kernel.
    ue1 = jnp.take(ua_embeddings_sub1, users, axis=0)                   # (B, D)
    ue2 = jnp.take(ua_embeddings_sub2, users, axis=0)                   # (B, D)

    # Tile sizes: multiples of 8 sublanes; bounded so (TB*TU f32 + TU*D) tiles
    # stay small for every generation's VMEM (incl. v7x's 64 MiB physical).
    TB = _round_up(block_b, 8) if block_b else min(_round_up(B, 8), 256)
    TU = _round_up(block_u, 8) if block_u else min(_round_up(U, 8), 512)
    B_pad = _round_up(B, TB)
    U_pad = _round_up(U, TU)

    if B_pad != B:
        ue1 = jnp.pad(ue1, ((0, B_pad - B), (0, 0)))
        ue2 = jnp.pad(ue2, ((0, B_pad - B), (0, 0)))
    e2 = ua_embeddings_sub2
    if U_pad != U:
        e2 = jnp.pad(e2, ((0, U_pad - U), (0, 0)))

    nb = B_pad // TB
    nk = U_pad // TU

    kernel = functools.partial(
        _ssl_loss_kernel,
        inv_temp=1.0 / float(ssl_temp),
        u_valid=U,
        tu=TU,
        mask_u=(U_pad != U),
        eps=1e-12,
    )

    per_user = pl.pallas_call(
        kernel,
        out_shape=jax.ShapeDtypeStruct((B_pad, 1), jnp.float32),
        grid_spec=pltpu.PrefetchScalarGridSpec(
            num_scalar_prefetch=0,
            grid=(nb, nk),                       # B-tiles parallel, U-tiles reduction
            in_specs=[
                pl.BlockSpec((TB, D), lambda i, k: (i, 0)),   # gathered sub1 rows
                pl.BlockSpec((TB, D), lambda i, k: (i, 0)),   # gathered sub2 rows
                pl.BlockSpec((TU, D), lambda i, k: (k, 0)),   # full sub2, U-tiled
            ],
            out_specs=pl.BlockSpec((TB, 1), lambda i, k: (i, 0)),  # resident over k
            scratch_shapes=[
                pltpu.VMEM((TB, D), jnp.bfloat16),   # cached normalized n1
                pltpu.VMEM((TB, 1), jnp.float32),    # pos / T
                pltpu.VMEM((TB, 1), jnp.float32),    # running sum of exp
            ]),
        compiler_params=pltpu.CompilerParams(
            dimension_semantics=("parallel", "arbitrary"),
            vmem_limit_bytes=32 * 1024 * 1024),
    )(ue1, ue2, e2)

    # Drop padded users; tiny B-length reduce + ssl_reg scale stays in XLA.
    return ssl_reg * jnp.sum(per_user[:B, 0])


def _reference(e1, e2, users, ssl_temp, ssl_reg):
    """Pure-JAX transcription of the PyTorch forward (for a correctness check)."""
    u1 = jnp.take(e1, users, axis=0)
    u2 = jnp.take(e2, users, axis=0)

    def norm(x):
        n = jnp.sqrt(jnp.sum(x * x, axis=1, keepdims=True))
        return x / jnp.maximum(n, 1e-12)

    n1, n2, n2a = norm(u1), norm(u2), norm(e2)
    pos = jnp.exp(jnp.sum(n1 * n2, axis=1) / ssl_temp)
    logits = jnp.matmul(n1, n2a.T, precision=jax.lax.Precision.HIGHEST)
    ttl = jnp.sum(jnp.exp(logits / ssl_temp), axis=1)
    return ssl_reg * (-jnp.sum(jnp.log(pos / ttl)))


if __name__ == "__main__":
    ssl_temp, ssl_reg = 0.2, 0.5

    # Case 1: small aligned shapes with a forced multi-step U grid to exercise
    # the online sum-of-exp accumulator (grid = (1, 2)).
    U, D, B = 64, 32, 8
    k1, k2, k3 = jax.random.split(jax.random.PRNGKey(0), 3)
    e1 = jax.random.normal(k1, (U, D), jnp.float32)
    e2 = jax.random.normal(k2, (U, D), jnp.float32)
    users = jax.random.randint(k3, (B,), 0, U, dtype=jnp.int32)

    loss = jax.block_until_ready(
        calc_ssl_loss(e1, e2, users, ssl_temp=ssl_temp, ssl_reg=ssl_reg, block_u=32))
    ref = _reference(e1, e2, users, ssl_temp, ssl_reg)
    assert loss.shape == () and bool(jnp.isfinite(loss))
    # bf16 MXU operands (f32 accumulation) -> slightly looser tolerance vs f32 ref.
    assert jnp.allclose(loss, ref, rtol=2e-2, atol=1e-2), (float(loss), float(ref))

    # Case 2: unaligned shapes to exercise B/U padding and the column mask.
    U2, D2, B2 = 100, 32, 10
    k4, k5, k6 = jax.random.split(jax.random.PRNGKey(1), 3)
    f1 = jax.random.normal(k4, (U2, D2), jnp.float32)
    f2 = jax.random.normal(k5, (U2, D2), jnp.float32)
    users2 = jax.random.randint(k6, (B2,), 0, U2, dtype=jnp.int32)

    loss2 = jax.block_until_ready(
        calc_ssl_loss(f1, f2, users2, ssl_temp=ssl_temp, ssl_reg=ssl_reg))
    ref2 = _reference(f1, f2, users2, ssl_temp, ssl_reg)
    assert bool(jnp.isfinite(loss2))
    assert jnp.allclose(loss2, ref2, rtol=2e-2, atol=1e-2), (float(loss2), float(ref2))

    print("KERNEL_OK")
</pallas_src>

<mosaic_0001>
module attributes {stable_mosaic.version = 11 : i64} {
  func.func @_ssl_loss_kernel(%arg0: i32, %arg1: i32, %arg2: memref<8x32xf32, #tpu.memory_space<vmem>>, %arg3: memref<8x32xf32, #tpu.memory_space<vmem>>, %arg4: memref<32x32xf32, #tpu.memory_space<vmem>>, %arg5: memref<8x1xf32, #tpu.memory_space<vmem>>, %arg6: memref<8x32xbf16, #tpu.memory_space<vmem>>, %arg7: memref<8x1xf32, #tpu.memory_space<vmem>>, %arg8: memref<8x1xf32, #tpu.memory_space<vmem>>) attributes {dimension_semantics = [#tpu.dimension_semantics<parallel>, #tpu.dimension_semantics<arbitrary>], iteration_bounds = array<i64: 1, 2>, scalar_prefetch = 0 : i64, scratch_operands = 3 : i64, tpu.core_type = #tpu.core_type<tc>, window_params = [{transform_indices = @transform_0, window_bounds = array<i64: 8, 32>}, {transform_indices = @transform_1, window_bounds = array<i64: 8, 32>}, {transform_indices = @transform_2, window_bounds = array<i64: 32, 32>}, {transform_indices = @transform_3, window_bounds = array<i64: 8, 1>}]} {
    %c0_i32 = arith.constant 0 : i32
    %0 = arith.cmpi eq, %arg1, %c0_i32 : i32
    %1 = arith.extui %0 : i1 to i32
    %c0_i32_0 = arith.constant 0 : i32
    %2 = arith.cmpi ne, %1, %c0_i32_0 : i32
    scf.if %2 {
      %c0_14 = arith.constant 0 : index
      %c0_15 = arith.constant 0 : index
      %28 = vector.load %arg2[%c0_14, %c0_15] : memref<8x32xf32, #tpu.memory_space<vmem>>, vector<8x32xf32>
      %29 = arith.mulf %28, %28 : vector<8x32xf32>
      %cst_16 = arith.constant dense<0.000000e+00> : vector<8xf32>
      %30 = vector.multi_reduction <add>, %29, %cst_16 [1] : vector<8x32xf32> to vector<8xf32>
      %31 = vector.shape_cast %30 : vector<8xf32> to vector<8x1xf32>
      %cst_17 = arith.constant 1.000000e-24 : f32
      %32 = vector.broadcast %cst_17 : f32 to vector<8x1xf32>
      %33 = arith.maximumf %31, %32 : vector<8x1xf32>
      %34 = math.rsqrt %33 : vector<8x1xf32>
      %35 = vector.broadcast %34 : vector<8x1xf32> to vector<8x32xf32>
      %36 = arith.mulf %28, %35 : vector<8x32xf32>
      %c0_18 = arith.constant 0 : index
      %c0_19 = arith.constant 0 : index
      %37 = vector.load %arg3[%c0_18, %c0_19] : memref<8x32xf32, #tpu.memory_space<vmem>>, vector<8x32xf32>
      %38 = arith.mulf %37, %37 : vector<8x32xf32>
      %cst_20 = arith.constant dense<0.000000e+00> : vector<8xf32>
      %39 = vector.multi_reduction <add>, %38, %cst_20 [1] : vector<8x32xf32> to vector<8xf32>
      %40 = vector.shape_cast %39 : vector<8xf32> to vector<8x1xf32>
      %cst_21 = arith.constant 1.000000e-24 : f32
      %41 = vector.broadcast %cst_21 : f32 to vector<8x1xf32>
      %42 = arith.maximumf %40, %41 : vector<8x1xf32>
      %43 = math.rsqrt %42 : vector<8x1xf32>
      %44 = vector.broadcast %43 : vector<8x1xf32> to vector<8x32xf32>
      %45 = arith.mulf %37, %44 : vector<8x32xf32>
      %46 = arith.mulf %36, %45 : vector<8x32xf32>
      %cst_22 = arith.constant dense<0.000000e+00> : vector<8xf32>
      %47 = vector.multi_reduction <add>, %46, %cst_22 [1] : vector<8x32xf32> to vector<8xf32>
      %48 = vector.shape_cast %47 : vector<8xf32> to vector<8x1xf32>
      %cst_23 = arith.constant 5.000000e+00 : f32
      %49 = vector.broadcast %cst_23 : f32 to vector<8x1xf32>
      %50 = arith.mulf %48, %49 : vector<8x1xf32>
      %c0_24 = arith.constant 0 : index
      %c0_25 = arith.constant 0 : index
      %51 = vector.load %arg7[%c0_24, %c0_25] : memref<8x1xf32, #tpu.memory_space<vmem>>, vector<8x1xf32>
      tpu.vector_store %arg7[%c0_24, %c0_25], %50 {strides = array<i32>} : memref<8x1xf32, #tpu.memory_space<vmem>>, vector<8x1xf32>,
      %52 = arith.truncf %36 : vector<8x32xf32> to vector<8x32xbf16>
      %c0_26 = arith.constant 0 : index
      %c0_27 = arith.constant 0 : index
      %53 = vector.load %arg6[%c0_26, %c0_27] : memref<8x32xbf16, #tpu.memory_space<vmem>>, vector<8x32xbf16>
      tpu.vector_store %arg6[%c0_26, %c0_27], %52 {strides = array<i32>} : memref<8x32xbf16, #tpu.memory_space<vmem>>, vector<8x32xbf16>,
      %cst_28 = arith.constant 0.000000e+00 : f32
      %54 = vector.broadcast %cst_28 : f32 to vector<8x1xf32>
      %c0_29 = arith.constant 0 : index
      %c0_30 = arith.constant 0 : index
      %55 = vector.load %arg8[%c0_29, %c0_30] : memref<8x1xf32, #tpu.memory_space<vmem>>, vector<8x1xf32>
      tpu.vector_store %arg8[%c0_29, %c0_30], %54 {strides = array<i32>} : memref<8x1xf32, #tpu.memory_space<vmem>>, vector<8x1xf32>,
    } else {
    }
    %c0 = arith.constant 0 : index
    %c0_1 = arith.constant 0 : index
    %3 = vector.load %arg4[%c0, %c0_1] : memref<32x32xf32, #tpu.memory_space<vmem>>, vector<32x32xf32>
    %4 = arith.mulf %3, %3 : vector<32x32xf32>
    %cst = arith.constant dense<0.000000e+00> : vector<32xf32>
    %5 = vector.multi_reduction <add>, %4, %cst [1] : vector<32x32xf32> to vector<32xf32>
    %6 = vector.shape_cast %5 : vector<32xf32> to vector<32x1xf32>
    %cst_2 = arith.constant 1.000000e-24 : f32
    %7 = vector.broadcast %cst_2 : f32 to vector<32x1xf32>
    %8 = arith.maximumf %6, %7 : vector<32x1xf32>
    %9 = math.rsqrt %8 : vector<32x1xf32>
    %10 = vector.broadcast %9 : vector<32x1xf32> to vector<32x32xf32>
    %11 = arith.mulf %3, %10 : vector<32x32xf32>
    %c0_3 = arith.constant 0 : index
    %c0_4 = arith.constant 0 : index
    %12 = vector.load %arg6[%c0_3, %c0_4] : memref<8x32xbf16, #tpu.memory_space<vmem>>, vector<8x32xbf16>
    %13 = arith.truncf %11 : vector<32x32xf32> to vector<32x32xbf16>
    "tpu.trace_start"() <{level = 10 : i32, message = "bd,ud->bu"}> : () -> ()
    %cst_5 = arith.constant dense<0.000000e+00> : vector<8x32xf32>
    %14 = tpu.matmul %12, %13, %cst_5 {dimension_numbers = #tpu.dot_dimension_numbers<[1], [1], [0], [0], [0, 0, 1, 0], [], []>} : vector<8x32xbf16>, vector<32x32xbf16>, vector<8x32xf32> -> vector<8x32xf32>
    "tpu.trace_stop"() : () -> ()
    %cst_6 = arith.constant 5.000000e+00 : f32
    %15 = vector.broadcast %cst_6 : f32 to vector<8x32xf32>
    %16 = arith.mulf %14, %15 : vector<8x32xf32>
    %cst_7 = arith.constant 5.000000e+00 : f32
    %17 = vector.broadcast %cst_7 : f32 to vector<8x32xf32>
    %18 = arith.subf %16, %17 : vector<8x32xf32>
    %19 = math.exp %18 : vector<8x32xf32>
    %c0_8 = arith.constant 0 : index
    %c0_9 = arith.constant 0 : index
    %20 = vector.load %arg8[%c0_8, %c0_9] : memref<8x1xf32, #tpu.memory_space<vmem>>, vector<8x1xf32>
    %cst_10 = arith.constant dense<0.000000e+00> : vector<8xf32>
    %21 = vector.multi_reduction <add>, %19, %cst_10 [1] : vector<8x32xf32> to vector<8xf32>
    %22 = vector.shape_cast %21 : vector<8xf32> to vector<8x1xf32>
    %23 = arith.addf %20, %22 : vector<8x1xf32>
    %c0_11 = arith.constant 0 : index
    %c0_12 = arith.constant 0 : index
    %24 = vector.load %arg8[%c0_11, %c0_12] : memref<8x1xf32, #tpu.memory_space<vmem>>, vector<8x1xf32>
    tpu.vector_store %arg8[%c0_11, %c0_12], %23 {strides = array<i32>} : memref<8x1xf32, #tpu.memory_space<vmem>>, vector<8x1xf32>,
    %c1_i32 = arith.constant 1 : i32
    %25 = arith.cmpi eq, %arg1, %c1_i32 : i32
    %26 = arith.extui %25 : i1 to i32
    %c0_i32_13 = arith.constant 0 : i32
    %27 = arith.cmpi ne, %26, %c0_i32_13 : i32
    scf.if %27 {
      %c0_14 = arith.constant 0 : index
      %c0_15 = arith.constant 0 : index
      %28 = vector.load %arg8[%c0_14, %c0_15] : memref<8x1xf32, #tpu.memory_space<vmem>>, vector<8x1xf32>
      %29 = math.log %28 : vector<8x1xf32>
      %cst_16 = arith.constant 5.000000e+00 : f32
      %30 = vector.broadcast %cst_16 : f32 to vector<8x1xf32>
      %31 = arith.addf %29, %30 : vector<8x1xf32>
      %c0_17 = arith.constant 0 : index
      %c0_18 = arith.constant 0 : index
      %32 = vector.load %arg7[%c0_17, %c0_18] : memref<8x1xf32, #tpu.memory_space<vmem>>, vector<8x1xf32>
      %33 = arith.subf %31, %32 : vector<8x1xf32>
      %c0_19 = arith.constant 0 : index
      %c0_20 = arith.constant 0 : index
      %34 = vector.load %arg5[%c0_19, %c0_20] : memref<8x1xf32, #tpu.memory_space<vmem>>, vector<8x1xf32>
      tpu.vector_store %arg5[%c0_19, %c0_20], %33 {strides = array<i32>} : memref<8x1xf32, #tpu.memory_space<vmem>>, vector<8x1xf32>,
    } else {
    }
    return
  }
  func.func @transform_0(%arg0: i32, %arg1: i32) -> (i32, i32) {
    %c0_i32 = arith.constant 0 : i32
    %c0_i32_0 = arith.constant 0 : i32
    return %arg0, %c0_i32 : i32, i32
  }
  func.func @transform_1(%arg0: i32, %arg1: i32) -> (i32, i32) {
    %c0_i32 = arith.constant 0 : i32
    %c0_i32_0 = arith.constant 0 : i32
    return %arg0, %c0_i32 : i32, i32
  }
  func.func @transform_2(%arg0: i32, %arg1: i32) -> (i32, i32) {
    %c0_i32 = arith.constant 0 : i32
    %c0_i32_0 = arith.constant 0 : i32
    return %arg1, %c0_i32 : i32, i32
  }
  func.func @transform_3(%arg0: i32, %arg1: i32) -> (i32, i32) {
    %c0_i32 = arith.constant 0 : i32
    %c0_i32_0 = arith.constant 0 : i32
    return %arg0, %c0_i32 : i32, i32
  }
}

</mosaic_0001>

<bundles_post_ra>
// kernel: calc_ssl_loss.1
= control target key start
LH: loop header
LB: loop body
LE: loop exit
PB: predicated region body
PF: predicated region fallthrough
CT: control target
= control target key end

     0   :  { %s562_s12 = smov 0   ;;  %s564_s13 = smov 0   ;;  %s625_s0 = inlined_call_operand.vmem [shape: f32[8,32], index: 0, kind: input, shape index: {}]   ;;  %s626_s1 = inlined_call_operand.vmem [shape: f32[8,32], index: 1, kind: input, shape index: {}]   ;;  %s627_s2 = inlined_call_operand.vmem [shape: f32[64,32], index: 2, kind: input, shape index: {}]   ;;  %s628_s3 = inlined_call_operand.vmem [shape: f32[8,1], index: 3, kind: output, shape index: {}]  }
   0x1   :  { %s566_s14 = smov 0  }
   0x2 LB: > { %s22_s15 = sadd.s32 1, %s533_s13  ;;  %p451_p0 = scmp.ge.s32.totalorder %s537_s14, 1  ;;  %s537_s14 = sphi %s566_s14, %s13_s14   ;;  %s533_s13 = sphi %s564_s13, %s630_s13   ;;  %s529_s12 = sphi %s562_s12, %s629_s12  }
   0x3   : > { %p23_p1 = scmp.ge.s32.totalorder %s22_s15, 2  ;;  %p168_p2 = scmp.lt.s32.totalorder %s537_s14, 3 }
   0x5   : > { %s632_s15 = smov (%p23_p1, %s22_s15), 0  ;;  %p169_p3 = pnand %p451_p0, %p168_p2 }
   0x6   : > { %s452_s16 = sshll.u32 (!%p169_p3), %s529_s12, 2  ;;  %p454_p5 = scmp.ne.s32.totalorder (!%p169_p3), %s529_s12, 0 }
   0x7   : > { %172 = sbr.rel (%p169_p3) target bundleno = 911 (0x38f), region = 32  ;;  %p208_p4 = scmp.lt.s32.totalorder (!%p169_p3), %s452_s16, 7 }
   0xe   : > { %s634_s16 = smov (!%p208_p4, %s452_s16), 7  ;;  %221 = sbr.rel (%p454_p5) target bundleno = 328 (0x148), region = 36 }
   0xf   : > { %s453_s17 = sshll.u32 %s634_s16, 3  ;;  %v222_v0 = vld [vmem:[%s625_s0] sm:$0xff] (!%p454_p5)  ;;  %vm224_vm0 = vcmask (!%p454_p5), 261120   ;;  %vm244_vm1 = vcmask (!%p454_p5), 7168   ;;  %v539_v6 = vmov (!%p454_p5), 0.0   ;;  %vm247_vm2 = vcmask (!%p454_p5), 257024  }
  0x10   : > { %s586_s20 = scalar_lea.vmem %s627_s2, %s453_s17  ;;  %v231_v1 = vld [vmem:[%s626_s1] sm:$0xff] (!%p454_p5)  ;;  %v223_v2 = vmul.f32 (!%p454_p5), %v222_v0, %v222_v0  ;;  %249 = vst.msk [vmem:[#allocation4] sm:$0xff] (!%p454_p5), %vm244_vm1, %v539_v6 }
  0x11   : > { %v232_v3 = vmul.f32 (!%p454_p5), %v231_v1, %v231_v1 }
  0x12   : > { %v225_v4 = vsel (!%p454_p5), %vm224_vm0, %v223_v2, 0.0 }
  0x13   : > { %226 = vadd.xlane.f32.xlu0 (!%p454_p5), %v225_v4  ;;  %v233_v5 = vsel (!%p454_p5), %vm224_vm0, %v232_v3, 0.0 }
  0x17   : > { %234 = vadd.xlane.f32.xlu0 %v233_v5 }
  0xa0   : > { %v227_v7 = vpop.xlane.xlu0 %226 }
  0xa1   : > { %v228_v8 = vmax.f32 %v227_v7, 1e-24 }
  0xa3   : > { %499 = vrsqrt.f32 %v228_v8 }
  0xa4   : > { %v235_v9 = vpop.xlane.xlu0 %234 }
  0xa5   : > { %v236_v10 = vmax.f32 %v235_v9, 1e-24 }
  0xa7   : > { %501 = vrsqrt.f32 %v236_v10 }
  0xad   : > { %v500_v11 = vpop.eup %499 }
  0xae   : > { %v230_v12 = vmul.f32 %v500_v11, %v222_v0 }
  0xb0   : > { %v246_v13 = vpack.c.bf16 %v230_v12, %v230_v12 }
  0xb1   : > { %v502_v14 = vpop.eup %501 }
  0xb2   : > { %v238_v15 = vmul.f32 %v502_v14, %v231_v1  ;;  %248 = vst.msk [vmem:[#allocation2] sm:$0xf] %vm247_vm2, %v246_v13 }
  0xb4   : > { %v239_v16 = vmul.f32 %v238_v15, %v230_v12 }
  0xb6   : > { %v240_v17 = vsel %vm224_vm0, %v239_v16, 0.0 }
  0xb7   : > { %241 = vadd.xlane.f32.xlu1 %v240_v17 }
 0x144   : > { %v242_v18 = vpop.xlane.xlu1 %241 }
 0x145   : > { %v243_v19 = vmul.f32 5.0, %v242_v18 }
 0x147   : > { %245 = vst.msk [vmem:[#allocation3] sm:$0xff] %vm244_vm1, %v243_v19 }
 0x148 PF: > { %v250_v20 = vld [vmem:[%s586_s20] sm:$0xff]  ;;  %vm258_vm3 = vcmask 261120   ;;  %v252_v21 = vld [vmem:[%s586_s20 + $0x10] sm:$0xff]  ;;  %v251_v22 = vld [vmem:[%s586_s20 + $0x8] sm:$0xff]  ;;  %v540_v32 = vmov 0.0   ;;  %vm541_vm4 = vmmov 0  }
 0x149   : > { %v254_v23 = vmul.f32 %v250_v20, %v250_v20  ;;  %v256_v24 = vmul.f32 %v252_v21, %v252_v21  ;;  %v255_v25 = vmul.f32 %v251_v22, %v251_v22  ;;  %v253_v26 = vld [vmem:[%s586_s20 + $0x18] sm:$0xff]  ;;  %464 = vmatprep.subr.bf16.mxu0 %v540_v32  ;;  %468 = vmatprep.mubr.msk.bf16.mxu0 %vm541_vm4, %v540_v32  ;;  %v283_v53 = vld [vmem:[#allocation2] sm:$0xf]  ;;  %vm344_vm5 = vcmask 7168   ;;  %p457_p6 = scmp.ne.s32.totalorder %s529_s12, 1 }
 0x14a   : > { %v257_v27 = vmul.f32 %v253_v26, %v253_v26  ;;  %v339_v63 = vld [vmem:[#allocation4] sm:$0xff] }
 0x14b   : > { %v259_v28 = vsel %vm258_vm3, %v254_v23, 0.0  ;;  %v265_v29 = vsel %vm258_vm3, %v256_v24, 0.0  ;;  %v262_v30 = vsel %vm258_vm3, %v255_v25, 0.0 }
 0x14c   : > { %260 = vadd.xlane.f32.xlu0 %v259_v28  ;;  %266 = vadd.xlane.f32.xlu1 %v265_v29  ;;  %v268_v31 = vsel %vm258_vm3, %v257_v27, 0.0 }
 0x14e   : > { %v354_v5 = vld [vmem:[#allocation3] sm:$0xff] (!%p457_p6) }
 0x150   : > { %263 = vadd.xlane.f32.xlu0 %v262_v30  ;;  %269 = vadd.xlane.f32.xlu1 %v268_v31 }
 0x1d9   : > { %v261_v33 = vpop.xlane.xlu0 %260  ;;  %v267_v34 = vpop.xlane.xlu1 %266 }
 0x1da   : > { %v271_v35 = vmax.f32 %v261_v33, 1e-24  ;;  %v273_v36 = vmax.f32 %v267_v34, 1e-24 }
 0x1dc   : > { %503 = vrsqrt.f32 %v271_v35 }
 0x1dd   : > { %v264_v37 = vpop.xlane.xlu0 %263  ;;  %v270_v38 = vpop.xlane.xlu1 %269 }
 0x1de   : > { %v272_v39 = vmax.f32 %v264_v37, 1e-24  ;;  %v274_v40 = vmax.f32 %v270_v38, 1e-24 }
 0x1e0   : > { %505 = vrsqrt.f32 %v272_v39 }
 0x1e1   : > { %507 = vrsqrt.f32 %v273_v36 }
 0x1e2   : > { %509 = vrsqrt.f32 %v274_v40 }
 0x1e6   : > { %v504_v41 = vpop.eup %503 }
 0x1e7   : > { %v279_v44 = vmul.f32 %v504_v41, %v250_v20 }
 0x1ea   : > { %v506_v42 = vpop.eup %505 }
 0x1eb   : > { %v508_v43 = vpop.eup %507  ;;  %v280_v45 = vmul.f32 %v506_v42, %v251_v22 }
 0x1ec   : > { %v510_v46 = vpop.eup %509  ;;  %v281_v49 = vmul.f32 %v508_v43, %v252_v21 }
 0x1ed   : > { %v284_v47 = vpack.c.bf16 %v280_v45, %v279_v44  ;;  %v282_v50 = vmul.f32 %v510_v46, %v253_v26 }
 0x1ef   : > { %v290_v48 = vsel %vm258_vm3, %v284_v47, 0  ;;  %v285_v51 = vpack.c.bf16 %v282_v50, %v281_v49 }
 0x1f0   : > { %465 = vmatpush3.bf16.xpose.msra.mxu0 %v290_v48 }
 0x1f1   : > { %466 = vmatprep.subr.bf16.mxu0 %v540_v32  ;;  %v293_v52 = vsel %vm258_vm3, %v285_v51, 0 }
 0x1f8   : > { %467 = vmatpush3.bf16.xpose.msra.mxu0 %v293_v52 }
 0x1ff   : > { %469 = vmatmul.mubr.msk.bf16.vlgmr.msra.gmra.mrb[0].mxu0 %vm258_vm3, %v283_v53 }
 0x2d2   : > { %v329_v54 = vpop.f32.mrb[0].mxu0 }
 0x2d3   : > { %v335_v55 = vmul.f32 5.0, %v329_v54  ;;  %v470_v56 = vpop.f32.mrb[1].mxu0 }
 0x2d4   : > { %v332_v57 = vpop.f32.mrb[2].mxu0 }
 0x2d5   : > { %v456_v58 = vadd.f32 -5.0, %v335_v55  ;;  %v471_v59 = vpop.f32.mrb[3].mxu0 }
 0x2d7   : > { %v337_v60 = vmul.f32 1.442695, %v456_v58 }
 0x2d9   : > { %511 = vpow2.f32 %v337_v60 }
 0x2e3   : > { %v512_v61 = vpop.eup %511 }
 0x2e4   : > { %v340_v62 = vsel %vm258_vm3, %v512_v61, 0.0 }
 0x2e5   : > { %341 = vadd.xlane.f32.xlu0 %v340_v62 }
 0x36f   : > { %349 = sbr.rel (%p457_p6) target bundleno = 911 (0x38f), region = 40 }
 0x372   : > { %v342_v0 = vpop.xlane.xlu0 %341 }
 0x373   : > { %v343_v1 = vadd.f32 %v342_v0, %v339_v63 }
 0x375   : > { %345 = vst.msk [vmem:[#allocation4] sm:$0xff] %vm344_vm5, %v343_v1 }
 0x37c   : > { %v350_v2 = vld [vmem:[#allocation4] sm:$0xff] }
 0x37d   : > { %513 = vlog2.f32 %v350_v2 }
 0x387   : > { %v514_v3 = vpop.eup %513 }
 0x388   : > { %v352_v4 = vmul.f32 0.6931472, %v514_v3 }
 0x38a   : > { %v353_v6 = vadd.f32 5.0, %v352_v4 }
 0x38c   : > { %v355_v7 = vsub.f32 %v353_v6, %v354_v5 }
 0x38e   : > { %356 = vst.msk [vmem:[%s628_s3] sm:$0xff] %vm344_vm5, %v355_v7 }
 0x38f PF: > { %s13_s14 = sadd.s32 1, %s537_s14   ;;  %s629_s12 = smov %s533_s13 }
 0x390   : > { %p10_p7 = scmp.ge.s32.totalorder %s13_s14, 4   ;;  %s630_s13 = smov %s632_s15 }
 0x392   :  { %12 = sbr.rel (!%p10_p7) target bundleno = 2 (0x2), region = 76 }

</bundles_post_ra>
